<compile_context>
chip_gen: v7x
topology: tpu7x:2x2x1
jax: 0.10.0
libtpu: 0.0.40
codegen_flags: <defaults>
</compile_context>

<pallas_src>
import jax
import jax.numpy as jnp
from jax.experimental import pallas as pl
from jax.experimental.pallas import tpu as pltpu

LANE = 128


def _round_up(n, m):
    return ((n + m - 1) // m) * m


def _fused_kernel(p_ref, w1_ref, b1_ref, w2_ref, b2_ref, ht_ref):
    """One row tile per grid step; both backbones fused into one matmul chain.

    p_ref  : (TROWS, KPAD)   bf16  im2col patches (zero-padded lanes)
    w1_ref : (KPAD, CPAD)    bf16  packed 3x3 conv weights, heads side-by-side
    b1_ref : (1, CPAD)       f32
    w2_ref : (CPAD, OPAD)    bf16  block-diagonal 1x1 heatmap-head weights
    b2_ref : (1, OPAD)       f32
    ht_ref : (TROWS, OPAD)   bf16  fused heatmaps: [.., :K]=head1, [.., K:2K]=head2
    """
    patches = p_ref[...]                                          # (TROWS, KPAD) bf16
    # 3x3 "same" conv (im2col form), both heads -> one MXU matmul, f32 accumulate.
    acc = jnp.dot(patches, w1_ref[...],
                  preferred_element_type=jnp.float32)             # (TROWS, CPAD) f32
    fea = jnp.maximum(acc + b1_ref[...], 0.0)                     # bias + ReLU (f32)
    # 1x1 conv heatmap heads == block-diagonal channel matmul.
    ht = jnp.dot(fea.astype(jnp.bfloat16), w2_ref[...],
                 preferred_element_type=jnp.float32) + b2_ref[...]
    ht_ref[...] = ht.astype(jnp.bfloat16)                         # full-lane bf16 store


def _pack_fused(params1, params2, kpad, cpad, opad):
    """Pack both backbones into one lane-dense, fused set of matrices."""
    w1a, b1a, w2a, b2a = params1
    w1b, b1b, w2b, b2b = params2
    kh, kw, cin, chid = w1a.shape
    kout = w2a.shape[-1]
    k = kh * kw * cin

    # (3,3,Cin,Chid) -> (9*Cin, Chid); row-major flatten matches the im2col
    # concat order (tap-major, channel-minor).  Heads stacked along hidden lanes.
    w1 = jnp.zeros((kpad, cpad), jnp.float32)
    w1 = w1.at[:k, :chid].set(w1a.reshape(k, chid))
    w1 = w1.at[:k, chid:2 * chid].set(w1b.reshape(k, chid))

    b1 = jnp.zeros((1, cpad), jnp.float32)
    b1 = b1.at[0, :chid].set(b1a.reshape(-1))
    b1 = b1.at[0, chid:2 * chid].set(b1b.reshape(-1))

    # Block-diagonal heatmap head: hidden[0:chid)->out[0:kout), hidden[chid:2chid)->out[kout:2kout).
    w2 = jnp.zeros((cpad, opad), jnp.float32)
    w2 = w2.at[:chid, :kout].set(w2a)
    w2 = w2.at[chid:2 * chid, kout:2 * kout].set(w2b)

    b2 = jnp.zeros((1, opad), jnp.float32)
    b2 = b2.at[0, :kout].set(b2a.reshape(-1))
    b2 = b2.at[0, kout:2 * kout].set(b2b.reshape(-1))

    return (w1.astype(jnp.bfloat16), b1, w2.astype(jnp.bfloat16), b2)


def pose_cotrain_forward(x_nchw, params1, params2, trows=512):
    """PoseCotrain.forward for a plain tensor input: returns (ht1, ht2) in NCHW."""
    B, C, H, W = x_nchw.shape
    chid = params1[0].shape[-1]
    kout = params1[2].shape[-1]
    HW = H * W
    rows = B * HW

    kpad = _round_up(9 * C, LANE)
    cpad = _round_up(2 * chid, LANE)
    opad = _round_up(2 * kout, LANE)

    # ---- wrapper-side im2col in bf16 (NCHW -> NHWC, pad, 9-tap concat, lane pad) ----
    x = jnp.transpose(x_nchw, (0, 2, 3, 1)).astype(jnp.bfloat16)        # (B,H,W,C)
    xpad = jnp.pad(x, ((0, 0), (1, 1), (1, 1), (0, 0)))
    taps = [xpad[:, ky:ky + H, kx:kx + W, :] for ky in range(3) for kx in range(3)]
    patches = jnp.concatenate(taps, axis=-1).reshape(rows, 9 * C)       # (B*HW, 9C)
    patches = jnp.pad(patches, ((0, 0), (0, kpad - 9 * C)))             # (B*HW, KPAD)

    # ---- row tiling: flatten batch into rows, pad rows to a tile multiple ----
    trows = min(trows, _round_up(rows, 8))
    rows_pad = _round_up(rows, trows)
    if rows_pad > rows:
        patches = jnp.pad(patches, ((0, rows_pad - rows), (0, 0)))

    # ---- pack both backbones' weights into a single fused, lane-dense set ----
    w1, b1, w2, b2 = _pack_fused(params1, params2, kpad, cpad, opad)

    out = pl.pallas_call(
        _fused_kernel,
        out_shape=jax.ShapeDtypeStruct((rows_pad, opad), jnp.bfloat16),
        grid=(rows_pad // trows,),
        in_specs=[
            pl.BlockSpec((trows, kpad), lambda r: (r, 0)),
            pl.BlockSpec((kpad, cpad), lambda r: (0, 0)),   # grid-invariant
            pl.BlockSpec((1, cpad), lambda r: (0, 0)),      # grid-invariant
            pl.BlockSpec((cpad, opad), lambda r: (0, 0)),   # grid-invariant
            pl.BlockSpec((1, opad), lambda r: (0, 0)),      # grid-invariant
        ],
        out_specs=pl.BlockSpec((trows, opad), lambda r: (r, 0)),
        compiler_params=pltpu.CompilerParams(
            dimension_semantics=("parallel",),
            vmem_limit_bytes=32 * 1024 * 1024),
    )(patches, w1, b1, w2, b2)

    # Strip row/lane padding, split the fused slab, back to PyTorch NCHW f32.
    out = out[:rows].reshape(B, H, W, opad).astype(jnp.float32)
    ht1 = jnp.transpose(out[..., :kout], (0, 3, 1, 2))
    ht2 = jnp.transpose(out[..., kout:2 * kout], (0, 3, 1, 2))
    return ht1, ht2
    # TODO(synk): list-input semi-supervised co-training branch (grid_sample /
    # mask_joint / random_cutout / mixup / cutmix augmentations) not ported.


# ----------------------------- reference & test -----------------------------

def _ref_backbone_ht(x_nchw, params):
    """Pure-JAX reference mirroring the kernel's bf16-matmul / f32-accumulate."""
    w1, b1, w2, b2 = params
    x = jnp.transpose(x_nchw, (0, 2, 3, 1)).astype(jnp.bfloat16)
    y = jax.lax.conv_general_dilated(
        x, w1.astype(jnp.bfloat16), window_strides=(1, 1), padding="SAME",
        dimension_numbers=("NHWC", "HWIO", "NHWC"),
        preferred_element_type=jnp.float32)
    fea = jnp.maximum(y + b1.reshape(1, 1, 1, -1), 0.0)
    ht = jnp.einsum("bhwc,ck->bhwk", fea.astype(jnp.bfloat16),
                    w2.astype(jnp.bfloat16),
                    preferred_element_type=jnp.float32) + b2.reshape(1, 1, 1, -1)
    return jnp.transpose(ht, (0, 3, 1, 2))


def _make_params(key, cin, chid, kout):
    k1, k2, k3, k4 = jax.random.split(key, 4)
    w1 = jax.random.normal(k1, (3, 3, cin, chid), jnp.float32) * 0.1
    b1 = jax.random.normal(k2, (1, chid), jnp.float32) * 0.01
    w2 = jax.random.normal(k3, (chid, kout), jnp.float32) * 0.1
    b2 = jax.random.normal(k4, (1, kout), jnp.float32) * 0.01
    return w1, b1, w2, b2


if __name__ == "__main__":
    B, C, H, W = 2, 4, 16, 16       # small NCHW input, PyTorch convention
    HIDDEN, NUM_JOINTS = 32, 24     # flip_pairs in __init__ imply >= 24 joints

    root = jax.random.PRNGKey(0)
    kx, kp1, kp2 = jax.random.split(root, 3)
    x = jax.random.normal(kx, (B, C, H, W), jnp.float32)

    params1 = _make_params(kp1, C, HIDDEN, NUM_JOINTS)
    params2 = _make_params(kp2, C, HIDDEN, NUM_JOINTS)

    ht1, ht2 = pose_cotrain_forward(x, params1, params2)
    ht1, ht2 = jax.block_until_ready((ht1, ht2))

    ref_ht1 = _ref_backbone_ht(x, params1)
    ref_ht2 = _ref_backbone_ht(x, params2)
    assert ht1.shape == (B, NUM_JOINTS, H, W) and ht2.shape == (B, NUM_JOINTS, H, W)
    # Kernel output is bf16 (deliberate HBM-traffic trade-off) -> slightly looser tol.
    assert jnp.allclose(ht1, ref_ht1, atol=1.5e-2, rtol=1.5e-2)
    assert jnp.allclose(ht2, ref_ht2, atol=1.5e-2, rtol=1.5e-2)

    print("KERNEL_OK")
</pallas_src>

<mosaic_0001>
module attributes {stable_mosaic.version = 11 : i64} {
  func.func @_fused_kernel(%arg0: i32, %arg1: memref<512x128xbf16, #tpu.memory_space<vmem>>, %arg2: memref<128x128xbf16, #tpu.memory_space<vmem>>, %arg3: memref<1x128xf32, #tpu.memory_space<vmem>>, %arg4: memref<128x128xbf16, #tpu.memory_space<vmem>>, %arg5: memref<1x128xf32, #tpu.memory_space<vmem>>, %arg6: memref<512x128xbf16, #tpu.memory_space<vmem>>) attributes {dimension_semantics = [#tpu.dimension_semantics<parallel>], iteration_bounds = array<i64: 1>, scalar_prefetch = 0 : i64, scratch_operands = 0 : i64, tpu.core_type = #tpu.core_type<tc>, window_params = [{transform_indices = @transform_0, window_bounds = array<i64: 512, 128>}, {pipeline_mode = #tpu.pipeline_mode<synchronous>, transform_indices = @transform_1, window_bounds = array<i64: 128, 128>}, {pipeline_mode = #tpu.pipeline_mode<synchronous>, transform_indices = @transform_2, window_bounds = array<i64: 1, 128>}, {pipeline_mode = #tpu.pipeline_mode<synchronous>, transform_indices = @transform_3, window_bounds = array<i64: 128, 128>}, {pipeline_mode = #tpu.pipeline_mode<synchronous>, transform_indices = @transform_4, window_bounds = array<i64: 1, 128>}, {transform_indices = @transform_5, window_bounds = array<i64: 512, 128>}]} {
    %c0 = arith.constant 0 : index
    %c0_0 = arith.constant 0 : index
    %0 = vector.load %arg1[%c0, %c0_0] : memref<512x128xbf16, #tpu.memory_space<vmem>>, vector<512x128xbf16>
    %c0_1 = arith.constant 0 : index
    %c0_2 = arith.constant 0 : index
    %1 = vector.load %arg2[%c0_1, %c0_2] : memref<128x128xbf16, #tpu.memory_space<vmem>>, vector<128x128xbf16>
    %cst = arith.constant dense<0.000000e+00> : vector<512x128xf32>
    %2 = tpu.matmul %0, %1, %cst {dimension_numbers = #tpu.dot_dimension_numbers<[1], [0], [0], [1], [0, 0, 1, 1], [], []>} : vector<512x128xbf16>, vector<128x128xbf16>, vector<512x128xf32> -> vector<512x128xf32>
    %c0_3 = arith.constant 0 : index
    %c0_4 = arith.constant 0 : index
    %3 = vector.load %arg3[%c0_3, %c0_4] : memref<1x128xf32, #tpu.memory_space<vmem>>, vector<1x128xf32>
    %4 = vector.broadcast %3 : vector<1x128xf32> to vector<512x128xf32>
    %5 = arith.addf %2, %4 : vector<512x128xf32>
    %cst_5 = arith.constant 0.000000e+00 : f32
    %6 = vector.broadcast %cst_5 : f32 to vector<512x128xf32>
    %7 = arith.maximumf %5, %6 : vector<512x128xf32>
    %8 = arith.truncf %7 : vector<512x128xf32> to vector<512x128xbf16>
    %c0_6 = arith.constant 0 : index
    %c0_7 = arith.constant 0 : index
    %9 = vector.load %arg4[%c0_6, %c0_7] : memref<128x128xbf16, #tpu.memory_space<vmem>>, vector<128x128xbf16>
    %cst_8 = arith.constant dense<0.000000e+00> : vector<512x128xf32>
    %10 = tpu.matmul %8, %9, %cst_8 {dimension_numbers = #tpu.dot_dimension_numbers<[1], [0], [0], [1], [0, 0, 1, 1], [], []>} : vector<512x128xbf16>, vector<128x128xbf16>, vector<512x128xf32> -> vector<512x128xf32>
    %c0_9 = arith.constant 0 : index
    %c0_10 = arith.constant 0 : index
    %11 = vector.load %arg5[%c0_9, %c0_10] : memref<1x128xf32, #tpu.memory_space<vmem>>, vector<1x128xf32>
    %12 = vector.broadcast %11 : vector<1x128xf32> to vector<512x128xf32>
    %13 = arith.addf %10, %12 : vector<512x128xf32>
    %14 = arith.truncf %13 : vector<512x128xf32> to vector<512x128xbf16>
    %c0_11 = arith.constant 0 : index
    %c0_12 = arith.constant 0 : index
    %15 = vector.load %arg6[%c0_11, %c0_12] : memref<512x128xbf16, #tpu.memory_space<vmem>>, vector<512x128xbf16>
    tpu.vector_store %arg6[%c0_11, %c0_12], %14 {strides = array<i32>} : memref<512x128xbf16, #tpu.memory_space<vmem>>, vector<512x128xbf16>,
    return
  }
  func.func @transform_0(%arg0: i32) -> (i32, i32) {
    %c0_i32 = arith.constant 0 : i32
    %c0_i32_0 = arith.constant 0 : i32
    return %arg0, %c0_i32 : i32, i32
  }
  func.func @transform_1(%arg0: i32) -> (i32, i32) {
    %c0_i32 = arith.constant 0 : i32
    %c0_i32_0 = arith.constant 0 : i32
    %c0_i32_1 = arith.constant 0 : i32
    return %c0_i32, %c0_i32_0 : i32, i32
  }
  func.func @transform_2(%arg0: i32) -> (i32, i32) {
    %c0_i32 = arith.constant 0 : i32
    %c0_i32_0 = arith.constant 0 : i32
    %c0_i32_1 = arith.constant 0 : i32
    return %c0_i32, %c0_i32_0 : i32, i32
  }
  func.func @transform_3(%arg0: i32) -> (i32, i32) {
    %c0_i32 = arith.constant 0 : i32
    %c0_i32_0 = arith.constant 0 : i32
    %c0_i32_1 = arith.constant 0 : i32
    return %c0_i32, %c0_i32_0 : i32, i32
  }
  func.func @transform_4(%arg0: i32) -> (i32, i32) {
    %c0_i32 = arith.constant 0 : i32
    %c0_i32_0 = arith.constant 0 : i32
    %c0_i32_1 = arith.constant 0 : i32
    return %c0_i32, %c0_i32_0 : i32, i32
  }
  func.func @transform_5(%arg0: i32) -> (i32, i32) {
    %c0_i32 = arith.constant 0 : i32
    %c0_i32_0 = arith.constant 0 : i32
    return %arg0, %c0_i32 : i32, i32
  }
}

</mosaic_0001>

<bundles_post_ra>
// kernel: tpu_custom_call.1
= control target key start
LH: loop header
LB: loop body
LE: loop exit
PB: predicated region body
PF: predicated region fallthrough
CT: control target
= control target key end

     0   :  { %10 = vsyncpa [#allocation3], 0  ;;  %s2471_s0 = inlined_call_operand.hbm [shape: bf16[512,128], index: 0, kind: input, shape index: {}]   ;;  %s2472_s1 = inlined_call_operand.hbm [shape: bf16[128,128], index: 1, kind: input, shape index: {}]   ;;  %s2473_s2 = inlined_call_operand.vmem [shape: f32[1,128], index: 2, kind: input, shape index: {}]   ;;  %s2474_s3 = inlined_call_operand.hbm [shape: bf16[128,128], index: 3, kind: input, shape index: {}]   ;;  %s2475_s4 = inlined_call_operand.vmem [shape: f32[1,128], index: 4, kind: input, shape index: {}]   ;;  %s2476_s5 = inlined_call_operand.hbm [shape: bf16[512,128], index: 5, kind: output, shape index: {}]  }
   0x1   :  { %11 = vsyncpa [#allocation6], 0 }
   0x2   :  { %12 = vsyncpa [#allocation4], 0  ;;  %s2230_s18 = smov [#allocation5]   ;;  %s2231_s20 = smov [#allocation2]  }
   0x3   :  { %s30_s19 = sshll.u32 %s2230_s18, 4  ;;  %s18_s21 = sshll.u32 %s2231_s20, 4  ;;  %s31_s19 = int_to_ptr.vmem [resolvable:$true] %s30_s19  ;;  %s2266_s21 = int_to_ptr.vmem [resolvable:$true] %s18_s21 }
   0x4   :  { %s2136_s24 = scalar_lea.hbm %s2472_s1, 1024 }
   0x5   :  { %p2137_p0 = scmp.ne.s32.totalorder %s2472_s1, %s2136_s24  ;;  %p2140_p1 = scmp.lt.u32.totalorder %s2136_s24, %s2472_s1 }
   0x7   :  { %p2142_p2 = pnand %p2140_p1, %p2137_p0 }
   0x9   :  { %2145 = shalt.err (!%p2142_p2)
}
   0xa   :  { %s2146_s29 = scalar_lea.vmem %s31_s19, 1024  ;;  %p2151_p4 = scmp.lt.s32.totalorder %s31_s19, %s31_s19 }
   0xb   :  { %p2147_p3 = scmp.ne.s32.totalorder %s31_s19, %s2146_s29  ;;  %p2152_p5 = scmp.lt.s32.totalorder %s2146_s29, %s2146_s29 }
   0xd   :  { %p2153_p6 = por %p2152_p5, %p2151_p4 }
   0xf   :  { %p2154_p7 = pnand %p2153_p6, %p2147_p3 }
  0x11   :  { %2157 = shalt.err (!%p2154_p7)
}
  0x12   :  { %s2232_s30 = smov 64   ;;  %s2233_s6 = smov 4  }
  0x13   :  { %36 = dma.hbm_to_vmem [thread:$0]  %s2472_s1, 1024, %s31_s19, [#allocation6], %s2232_s30, %s2232_s30, %s2233_s6  }
  0x14   :  { %s2158_s11 = scalar_lea.hbm %s2471_s0, 4096 }
  0x15   :  { %p2159_p8 = scmp.ne.s32.totalorder %s2471_s0, %s2158_s11  ;;  %p2162_p9 = scmp.lt.u32.totalorder %s2158_s11, %s2471_s0 }
  0x17   :  { %p2164_p10 = pnand %p2162_p9, %p2159_p8 }
  0x19   :  { %2167 = shalt.err (!%p2164_p10)
}
  0x1a   :  { %s2168_s16 = scalar_lea.vmem %s2266_s21, 4096  ;;  %p2173_p12 = scmp.lt.s32.totalorder %s2266_s21, %s2266_s21 }
  0x1b   :  { %p2169_p11 = scmp.ne.s32.totalorder %s2266_s21, %s2168_s16  ;;  %p2174_p13 = scmp.lt.s32.totalorder %s2168_s16, %s2168_s16 }
  0x1d   :  { %p2175_p0 = por %p2174_p13, %p2173_p12 }
  0x1f   :  { %p2176_p1 = pnand %p2175_p0, %p2169_p11 }
  0x21   :  { %2179 = shalt.err (!%p2176_p1)
}
  0x22   :  { %24 = dma.hbm_to_vmem [thread:$0]  %s2471_s0, 4096, %s2266_s21, [#allocation3], %s2232_s30, %s2232_s30, %s2233_s6  }
  0x23   :  { %s2234_s18 = smov [#allocation7]   ;;  %s2180_s23 = scalar_lea.hbm %s2474_s3, 1024 }
  0x24   :  { %s44_s19 = sshll.u32 %s2234_s18, 4  ;;  %p2181_p2 = scmp.ne.s32.totalorder %s2474_s3, %s2180_s23  ;;  %s45_s19 = int_to_ptr.vmem [resolvable:$true] %s44_s19 }
  0x25   :  { %p2184_p3 = scmp.lt.u32.totalorder %s2180_s23, %s2474_s3 }
  0x27   :  { %p2186_p4 = pnand %p2184_p3, %p2181_p2 }
  0x29   :  { %2189 = shalt.err (!%p2186_p4)
}
  0x2a   :  { %s2190_s28 = scalar_lea.vmem %s45_s19, 1024  ;;  %p2195_p6 = scmp.lt.s32.totalorder %s45_s19, %s45_s19 }
  0x2b   :  { %p2191_p5 = scmp.ne.s32.totalorder %s45_s19, %s2190_s28  ;;  %p2196_p7 = scmp.lt.s32.totalorder %s2190_s28, %s2190_s28 }
  0x2d   :  { %p2197_p8 = por %p2196_p7, %p2195_p6 }
  0x2f   :  { %p2198_p9 = pnand %p2197_p8, %p2191_p5 }
  0x31   :  { %2201 = shalt.err (!%p2198_p9)
}
  0x32   :  { %50 = dma.hbm_to_vmem [thread:$0]  %s2474_s3, 1024, %s45_s19, [#allocation6], %s2232_s30, %s2232_s30, %s2233_s6  }
  0x33   :  { %2224 = dma.done.wait [#allocation3], 4096  }
  0x34   :  { %2225 = vsyncadd [#allocation3], 4294963200 }
  0x35   :  { %2226 = dma.done.wait [#allocation6], 2048  }
  0x36   :  { %2227 = vsyncadd [#allocation6], 4294965248  ;;  %v2088_v0 = vld [vmem:[#allocation5] sm:$0xff]   ;;  %v2089_v1 = vld [vmem:[#allocation5 + $0x8] sm:$0xff]  }
  0x37   :  { %1922 = vmatprep.subr.bf16.mxu0 %v2088_v0  ;;  %v2090_v2 = vld [vmem:[#allocation5 + $0x10] sm:$0xff]   ;;  %v2091_v3 = vld [vmem:[#allocation5 + $0x18] sm:$0xff]   ;;  %v2096_v4 = vld [vmem:[#allocation2] sm:$0xff]  }
  0x38   :  { %1923 = vmatpush3.bf16.msra.mxu0 %v2088_v0  ;;  %1938 = vmatprep.mubr.bf16.mxu0 %v2096_v4  ;;  %v2092_v5 = vld [vmem:[#allocation5 + $0x20] sm:$0xff]   ;;  %v2093_v6 = vld [vmem:[#allocation5 + $0x28] sm:$0xff]   ;;  %v2094_v7 = vld [vmem:[#allocation5 + $0x30] sm:$0xff]  }
  0x39   :  { %1924 = vmatprep.subr.bf16.mxu0 %v2089_v1  ;;  %v2095_v8 = vld [vmem:[#allocation5 + $0x38] sm:$0xff]   ;;  %v2097_v9 = vld [vmem:[#allocation2 + $0x8] sm:$0xff]   ;;  %v2098_v10 = vld [vmem:[#allocation2 + $0x10] sm:$0xff]  }
  0x3a   :  { %v2099_v11 = vld [vmem:[#allocation2 + $0x18] sm:$0xff]   ;;  %v2100_v12 = vld [vmem:[#allocation2 + $0x20] sm:$0xff]   ;;  %v2129_v14 = vld [vmem:[#allocation7 + $0x8] sm:$0xff]  }
  0x3b   :  { %v2128_v13 = vld [vmem:[#allocation7] sm:$0xff]   ;;  %v2130_v15 = vld [vmem:[#allocation7 + $0x10] sm:$0xff]   ;;  %v2101_v16 = vld [vmem:[#allocation2 + $0x28] sm:$0xff]  }
  0x3c   :  { %1925 = vmatpush3.bf16.msra.mxu0 %v2089_v1  ;;  %2002 = vmatprep.subr.bf16.mxu1 %v2128_v13  ;;  %v2102_v17 = vld [vmem:[#allocation2 + $0x30] sm:$0xff]   ;;  %v2131_v18 = vld [vmem:[#allocation7 + $0x18] sm:$0xff]   ;;  %v2132_v19 = vld [vmem:[#allocation7 + $0x20] sm:$0xff]  }
  0x3d   :  { %1926 = vmatprep.subr.bf16.mxu0 %v2090_v2  ;;  %2003 = vmatpush3.bf16.msra.mxu1 %v2128_v13  ;;  %v2103_v20 = vld [vmem:[#allocation2 + $0x38] sm:$0xff]   ;;  %v2104_v21 = vld [vmem:[#allocation2 + $0x40] sm:$0xff]   ;;  %v2133_v22 = vld [vmem:[#allocation7 + $0x28] sm:$0xff]  }
  0x3e   :  { %2004 = vmatprep.subr.bf16.mxu1 %v2129_v14  ;;  %v2105_v23 = vld [vmem:[#allocation2 + $0x48] sm:$0xff]   ;;  %v2106_v24 = vld [vmem:[#allocation2 + $0x50] sm:$0xff]   ;;  %v2107_v25 = vld [vmem:[#allocation2 + $0x58] sm:$0xff]  }
  0x3f   :  { %v2108_v26 = vld [vmem:[#allocation2 + $0x60] sm:$0xff]   ;;  %v2109_v27 = vld [vmem:[#allocation2 + $0x68] sm:$0xff]   ;;  %v2110_v28 = vld [vmem:[#allocation2 + $0x70] sm:$0xff]  }
  0x40   :  { %1927 = vmatpush3.bf16.msra.mxu0 %v2090_v2  ;;  %v2111_v29 = vld [vmem:[#allocation2 + $0x78] sm:$0xff]   ;;  %v2112_v30 = vld [vmem:[#allocation2 + $0x80] sm:$0xff]   ;;  %v2113_v31 = vld [vmem:[#allocation2 + $0x88] sm:$0xff]  }
  0x41   :  { %1928 = vmatprep.subr.bf16.mxu0 %v2091_v3  ;;  %2005 = vmatpush3.bf16.msra.mxu1 %v2129_v14  ;;  %v2114_v32 = vld [vmem:[#allocation2 + $0x90] sm:$0xff]   ;;  %v2115_v33 = vld [vmem:[#allocation2 + $0x98] sm:$0xff]   ;;  %v2116_v34 = vld [vmem:[#allocation2 + $0xa0] sm:$0xff]  }
  0x42   :  { %2006 = vmatprep.subr.bf16.mxu1 %v2130_v15  ;;  %v2117_v35 = vld [vmem:[#allocation2 + $0xa8] sm:$0xff]   ;;  %v2118_v36 = vld [vmem:[#allocation2 + $0xb0] sm:$0xff]   ;;  %v2119_v37 = vld [vmem:[#allocation2 + $0xb8] sm:$0xff]  }
  0x43   :  { %v2134_v38 = vld [vmem:[#allocation7 + $0x30] sm:$0xff]   ;;  %v2120_v39 = vld [vmem:[#allocation2 + $0xc0] sm:$0xff]   ;;  %v2135_v40 = vld [vmem:[#allocation7 + $0x38] sm:$0xff]  }
  0x44   :  { %1929 = vmatpush3.bf16.msra.mxu0 %v2091_v3  ;;  %v2121_v41 = vld [vmem:[#allocation2 + $0xc8] sm:$0xff]   ;;  %v2122_v42 = vld [vmem:[#allocation2 + $0xd0] sm:$0xff]   ;;  %v2123_v43 = vld [vmem:[#allocation2 + $0xd8] sm:$0xff]  }
  0x45   :  { %1930 = vmatprep.subr.bf16.mxu0 %v2092_v5  ;;  %2007 = vmatpush3.bf16.msra.mxu1 %v2130_v15  ;;  %v2124_v44 = vld [vmem:[#allocation2 + $0xe0] sm:$0xff]   ;;  %v2125_v45 = vld [vmem:[#allocation2 + $0xe8] sm:$0xff]   ;;  %v2126_v46 = vld [vmem:[#allocation2 + $0xf0] sm:$0xff]  }
  0x46   :  { %2008 = vmatprep.subr.bf16.mxu1 %v2131_v18  ;;  %v2127_v47 = vld [vmem:[#allocation2 + $0xf8] sm:$0xff]   ;;  %v2321_v48 = vld [vmem:[%s2473_s2] ss:$0 sm:$0xff] }
  0x48   :  { %1931 = vmatpush3.bf16.msra.mxu0 %v2092_v5 }
  0x49   :  { %1932 = vmatprep.subr.bf16.mxu0 %v2093_v6  ;;  %2009 = vmatpush3.bf16.msra.mxu1 %v2131_v18 }
  0x4a   :  { %2010 = vmatprep.subr.bf16.mxu1 %v2132_v19 }
  0x4c   :  { %1933 = vmatpush3.bf16.msra.mxu0 %v2093_v6 }
  0x4d   :  { %1934 = vmatprep.subr.bf16.mxu0 %v2094_v7  ;;  %2011 = vmatpush3.bf16.msra.mxu1 %v2132_v19 }
  0x4e   :  { %2012 = vmatprep.subr.bf16.mxu1 %v2133_v22 }
  0x50   :  { %1935 = vmatpush3.bf16.msra.mxu0 %v2094_v7 }
  0x51   :  { %1936 = vmatprep.subr.bf16.mxu0 %v2095_v8  ;;  %2013 = vmatpush3.bf16.msra.mxu1 %v2133_v22 }
  0x52   :  { %2014 = vmatprep.subr.bf16.mxu1 %v2134_v38 }
  0x54   :  { %1937 = vmatpush3.bf16.msra.mxu0 %v2095_v8 }
  0x55   :  { %2015 = vmatpush3.bf16.msra.mxu1 %v2134_v38 }
  0x56   :  { %2016 = vmatprep.subr.bf16.mxu1 %v2135_v40 }
  0x57   :  { %1939 = vmatmul.mubr.bf16.vlgmr.msra.gmra.mrb[0].mxu0 %v2097_v9 }
  0x58   :  { %1942 = vmatprep.mubr.bf16.mxu0 %v2098_v10 }
  0x59   :  { %2017 = vmatpush3.bf16.msra.mxu1 %v2135_v40 }
  0x5f   :  { %1943 = vmatmul.mubr.bf16.gmra.mrb[4].mxu0 %v2099_v11 }
  0x60   :  { %1946 = vmatprep.mubr.bf16.mxu0 %v2100_v12 }
  0x67   :  { %1947 = vmatmul.mubr.bf16.gmra.mrb[8].mxu0 %v2101_v16 }
  0x68   :  { %1950 = vmatprep.mubr.bf16.mxu0 %v2102_v17 }
  0x6f   :  { %1951 = vmatmul.mubr.bf16.gmra.mrb[12].mxu0 %v2103_v20 }
  0x70   :  { %1954 = vmatprep.mubr.bf16.mxu0 %v2104_v21 }
  0x77   :  { %1955 = vmatmul.mubr.bf16.gmra.mrb[16].mxu0 %v2105_v23 }
  0x78   :  { %1958 = vmatprep.mubr.bf16.mxu0 %v2106_v24 }
  0x7f   :  { %1959 = vmatmul.mubr.bf16.gmra.mrb[20].mxu0 %v2107_v25 }
  0x80   :  { %1962 = vmatprep.mubr.bf16.mxu0 %v2108_v26 }
  0x87   :  { %1963 = vmatmul.mubr.bf16.gmra.mrb[24].mxu0 %v2109_v27 }
  0x88   :  { %1966 = vmatprep.mubr.bf16.mxu0 %v2110_v28 }
  0x8f   :  { %1967 = vmatmul.mubr.bf16.gmra.mrb[28].mxu0 %v2111_v29 }
  0x90   :  { %1970 = vmatprep.mubr.bf16.mxu0 %v2112_v30 }
  0x97   :  { %1971 = vmatmul.mubr.bf16.gmra.mrb[32].mxu0 %v2113_v31 }
  0x98   :  { %1974 = vmatprep.mubr.bf16.mxu0 %v2114_v32 }
  0x9f   :  { %1975 = vmatmul.mubr.bf16.gmra.mrb[36].mxu0 %v2115_v33 }
  0xa0   :  { %1978 = vmatprep.mubr.bf16.mxu0 %v2116_v34 }
  0xa7   :  { %1979 = vmatmul.mubr.bf16.gmra.mrb[40].mxu0 %v2117_v35 }
  0xa8   :  { %1982 = vmatprep.mubr.bf16.mxu0 %v2118_v36 }
  0xaf   :  { %1983 = vmatmul.mubr.bf16.gmra.mrb[44].mxu0 %v2119_v37 }
  0xb0   :  { %1986 = vmatprep.mubr.bf16.mxu0 %v2120_v39 }
  0xb7   :  { %1987 = vmatmul.mubr.bf16.gmra.mrb[48].mxu0 %v2121_v41 }
  0xb8   :  { %1990 = vmatprep.mubr.bf16.mxu0 %v2122_v42 }
  0xbf   :  { %1991 = vmatmul.mubr.bf16.gmra.mrb[52].mxu0 %v2123_v43 }
  0xc0   :  { %1994 = vmatprep.mubr.bf16.mxu0 %v2124_v44 }
  0xc7   :  { %1995 = vmatmul.mubr.bf16.gmra.mrb[56].mxu0 %v2125_v45 }
  0xc8   :  { %1998 = vmatprep.mubr.bf16.mxu0 %v2126_v46 }
  0xcf   :  { %1999 = vmatmul.mubr.bf16.gmra.mrb[60].mxu0 %v2127_v47 }
 0x12a   :  { %v1940_v49 = vpop.f32.mrb[0].mxu0 }
 0x12b   :  { %v433_v50 = vadd.f32 %v1940_v49, %v2321_v48  ;;  %v424_v51 = vpop.f32.mrb[1].mxu0 }
 0x12c   :  { %v425_v52 = vadd.f32 %v2321_v48, %v424_v51  ;;  %v1941_v53 = vpop.f32.mrb[2].mxu0 }
 0x12d   :  { %v436_v54 = vadd.f32 %v1941_v53, %v2321_v48  ;;  %v427_v55 = vpop.f32.mrb[3].mxu0  ;;  %v681_v57 = vmax.f32 %v433_v50, 0.0 }
 0x12e   :  { %v428_v56 = vadd.f32 %v2321_v48, %v427_v55  ;;  %v679_v59 = vmax.f32 %v425_v52, 0.0 }
 0x12f   :  { %v682_v58 = vmax.f32 %v436_v54, 0.0 }
 0x130   :  { %v680_v60 = vmax.f32 %v428_v56, 0.0 }
 0x131   :  { %v744_v61 = vpack.c.bf16 %v682_v58, %v681_v57 }
 0x132   :  { %v1944_v62 = vpop.f32.mrb[4].mxu0  ;;  %v743_v63 = vpack.c.bf16 %v680_v60, %v679_v59 }
 0x133   :  { %v449_v0 = vadd.f32 %v1944_v62, %v2321_v48  ;;  %v440_v1 = vpop.f32.mrb[5].mxu0 }
 0x134   :  { %v441_v2 = vadd.f32 %v2321_v48, %v440_v1  ;;  %v1945_v3 = vpop.f32.mrb[6].mxu0  ;;  %2018 = vmatprep.mubr.bf16.mxu1 %v743_v63 }
 0x135   :  { %v452_v4 = vadd.f32 %v1945_v3, %v2321_v48  ;;  %v443_v5 = vpop.f32.mrb[7].mxu0  ;;  %2019 = vmatmul.mubr.bf16.vlgmr.msra.gmra.mrb[0].mxu1 %v744_v61  ;;  %v685_v7 = vmax.f32 %v449_v0, 0.0 }
 0x136   :  { %v444_v6 = vadd.f32 %v2321_v48, %v443_v5  ;;  %v683_v9 = vmax.f32 %v441_v2, 0.0 }
 0x137   :  { %v686_v8 = vmax.f32 %v452_v4, 0.0 }
 0x138   :  { %v684_v10 = vmax.f32 %v444_v6, 0.0 }
 0x139   :  { %v746_v11 = vpack.c.bf16 %v686_v8, %v685_v7 }
 0x13a   :  { %v745_v12 = vpack.c.bf16 %v684_v10, %v683_v9  ;;  %v1948_v13 = vpop.f32.mrb[8].mxu0 }
 0x13b   :  { %v465_v14 = vadd.f32 %v1948_v13, %v2321_v48  ;;  %v456_v15 = vpop.f32.mrb[9].mxu0 }
 0x13c   :  { %v457_v16 = vadd.f32 %v2321_v48, %v456_v15  ;;  %v1949_v17 = vpop.f32.mrb[10].mxu0  ;;  %2022 = vmatprep.mubr.bf16.mxu1 %v745_v12 }
 0x13d   :  { %v468_v18 = vadd.f32 %v1949_v17, %v2321_v48  ;;  %v459_v19 = vpop.f32.mrb[11].mxu0  ;;  %2023 = vmatmul.mubr.bf16.gmra.mrb[4].mxu1 %v746_v11  ;;  %v689_v21 = vmax.f32 %v465_v14, 0.0 }
 0x13e   :  { %v460_v20 = vadd.f32 %v2321_v48, %v459_v19  ;;  %v687_v23 = vmax.f32 %v457_v16, 0.0 }
 0x13f   :  { %v690_v22 = vmax.f32 %v468_v18, 0.0 }
 0x140   :  { %v688_v24 = vmax.f32 %v460_v20, 0.0 }
 0x141   :  { %v748_v25 = vpack.c.bf16 %v690_v22, %v689_v21 }
 0x142   :  { %v747_v26 = vpack.c.bf16 %v688_v24, %v687_v23  ;;  %v1952_v27 = vpop.f32.mrb[12].mxu0 }
 0x143   :  { %v481_v28 = vadd.f32 %v1952_v27, %v2321_v48  ;;  %v472_v29 = vpop.f32.mrb[13].mxu0 }
 0x144   :  { %v473_v30 = vadd.f32 %v2321_v48, %v472_v29  ;;  %v1953_v31 = vpop.f32.mrb[14].mxu0  ;;  %2026 = vmatprep.mubr.bf16.mxu1 %v747_v26 }
 0x145   :  { %v484_v32 = vadd.f32 %v1953_v31, %v2321_v48  ;;  %v475_v33 = vpop.f32.mrb[15].mxu0  ;;  %2027 = vmatmul.mubr.bf16.gmra.mrb[8].mxu1 %v748_v25  ;;  %v693_v35 = vmax.f32 %v481_v28, 0.0 }
 0x146   :  { %v476_v34 = vadd.f32 %v2321_v48, %v475_v33  ;;  %v691_v37 = vmax.f32 %v473_v30, 0.0 }
 0x147   :  { %v694_v36 = vmax.f32 %v484_v32, 0.0 }
 0x148   :  { %v692_v38 = vmax.f32 %v476_v34, 0.0 }
 0x149   :  { %v750_v39 = vpack.c.bf16 %v694_v36, %v693_v35 }
 0x14a   :  { %v749_v40 = vpack.c.bf16 %v692_v38, %v691_v37  ;;  %v1956_v41 = vpop.f32.mrb[16].mxu0 }
 0x14b   :  { %v497_v42 = vadd.f32 %v1956_v41, %v2321_v48  ;;  %v488_v43 = vpop.f32.mrb[17].mxu0 }
 0x14c   :  { %v489_v44 = vadd.f32 %v2321_v48, %v488_v43  ;;  %v1957_v45 = vpop.f32.mrb[18].mxu0  ;;  %2030 = vmatprep.mubr.bf16.mxu1 %v749_v40 }
 0x14d   :  { %v500_v46 = vadd.f32 %v1957_v45, %v2321_v48  ;;  %v491_v47 = vpop.f32.mrb[19].mxu0  ;;  %2031 = vmatmul.mubr.bf16.gmra.mrb[12].mxu1 %v750_v39  ;;  %v697_v50 = vmax.f32 %v497_v42, 0.0 }
 0x14e   :  { %v492_v49 = vadd.f32 %v2321_v48, %v491_v47  ;;  %v695_v52 = vmax.f32 %v489_v44, 0.0 }
 0x14f   :  { %v698_v51 = vmax.f32 %v500_v46, 0.0 }
 0x150   :  { %v696_v53 = vmax.f32 %v492_v49, 0.0 }
 0x151   :  { %v752_v54 = vpack.c.bf16 %v698_v51, %v697_v50 }
 0x152   :  { %v751_v55 = vpack.c.bf16 %v696_v53, %v695_v52  ;;  %v1960_v56 = vpop.f32.mrb[20].mxu0 }
 0x153   :  { %v513_v57 = vadd.f32 %v1960_v56, %v2321_v48  ;;  %v504_v58 = vpop.f32.mrb[21].mxu0 }
 0x154   :  { %v505_v59 = vadd.f32 %v2321_v48, %v504_v58  ;;  %v1961_v60 = vpop.f32.mrb[22].mxu0  ;;  %2034 = vmatprep.mubr.bf16.mxu1 %v751_v55 }
 0x155   :  { %v516_v61 = vadd.f32 %v1961_v60, %v2321_v48  ;;  %v507_v62 = vpop.f32.mrb[23].mxu0  ;;  %2035 = vmatmul.mubr.bf16.gmra.mrb[16].mxu1 %v752_v54  ;;  %v701_v0 = vmax.f32 %v513_v57, 0.0 }
 0x156   :  { %v508_v63 = vadd.f32 %v2321_v48, %v507_v62  ;;  %v699_v2 = vmax.f32 %v505_v59, 0.0 }
 0x157   :  { %v702_v1 = vmax.f32 %v516_v61, 0.0 }
 0x158   :  { %v700_v3 = vmax.f32 %v508_v63, 0.0 }
 0x159   :  { %v754_v4 = vpack.c.bf16 %v702_v1, %v701_v0 }
 0x15a   :  { %v753_v5 = vpack.c.bf16 %v700_v3, %v699_v2  ;;  %v1964_v6 = vpop.f32.mrb[24].mxu0 }
 0x15b   :  { %v529_v7 = vadd.f32 %v1964_v6, %v2321_v48  ;;  %v520_v8 = vpop.f32.mrb[25].mxu0 }
 0x15c   :  { %v521_v9 = vadd.f32 %v2321_v48, %v520_v8  ;;  %v1965_v10 = vpop.f32.mrb[26].mxu0  ;;  %2038 = vmatprep.mubr.bf16.mxu1 %v753_v5 }
 0x15d   :  { %v532_v11 = vadd.f32 %v1965_v10, %v2321_v48  ;;  %v523_v12 = vpop.f32.mrb[27].mxu0  ;;  %2039 = vmatmul.mubr.bf16.gmra.mrb[20].mxu1 %v754_v4  ;;  %v705_v14 = vmax.f32 %v529_v7, 0.0 }
 0x15e   :  { %v524_v13 = vadd.f32 %v2321_v48, %v523_v12  ;;  %v703_v16 = vmax.f32 %v521_v9, 0.0 }
 0x15f   :  { %v706_v15 = vmax.f32 %v532_v11, 0.0 }
 0x160   :  { %v704_v17 = vmax.f32 %v524_v13, 0.0 }
 0x161   :  { %v756_v18 = vpack.c.bf16 %v706_v15, %v705_v14 }
 0x162   :  { %v755_v19 = vpack.c.bf16 %v704_v17, %v703_v16  ;;  %v1968_v20 = vpop.f32.mrb[28].mxu0 }
 0x163   :  { %v545_v21 = vadd.f32 %v1968_v20, %v2321_v48  ;;  %v536_v22 = vpop.f32.mrb[29].mxu0 }
 0x164   :  { %v537_v23 = vadd.f32 %v2321_v48, %v536_v22  ;;  %v1969_v24 = vpop.f32.mrb[30].mxu0  ;;  %2042 = vmatprep.mubr.bf16.mxu1 %v755_v19 }
 0x165   :  { %v548_v25 = vadd.f32 %v1969_v24, %v2321_v48  ;;  %v539_v26 = vpop.f32.mrb[31].mxu0  ;;  %2043 = vmatmul.mubr.bf16.gmra.mrb[24].mxu1 %v756_v18  ;;  %v709_v28 = vmax.f32 %v545_v21, 0.0 }
 0x166   :  { %v540_v27 = vadd.f32 %v2321_v48, %v539_v26  ;;  %v707_v30 = vmax.f32 %v537_v23, 0.0 }
 0x167   :  { %v710_v29 = vmax.f32 %v548_v25, 0.0 }
 0x168   :  { %v708_v31 = vmax.f32 %v540_v27, 0.0 }
 0x169   :  { %v758_v32 = vpack.c.bf16 %v710_v29, %v709_v28 }
 0x16a   :  { %v757_v33 = vpack.c.bf16 %v708_v31, %v707_v30  ;;  %v1972_v34 = vpop.f32.mrb[32].mxu0 }
 0x16b   :  { %v561_v35 = vadd.f32 %v1972_v34, %v2321_v48  ;;  %v552_v36 = vpop.f32.mrb[33].mxu0 }
 0x16c   :  { %v553_v37 = vadd.f32 %v2321_v48, %v552_v36  ;;  %v1973_v38 = vpop.f32.mrb[34].mxu0  ;;  %2046 = vmatprep.mubr.bf16.mxu1 %v757_v33 }
 0x16d   :  { %v564_v39 = vadd.f32 %v1973_v38, %v2321_v48  ;;  %v555_v40 = vpop.f32.mrb[35].mxu0  ;;  %2047 = vmatmul.mubr.bf16.gmra.mrb[28].mxu1 %v758_v32  ;;  %v713_v42 = vmax.f32 %v561_v35, 0.0 }
 0x16e   :  { %v556_v41 = vadd.f32 %v2321_v48, %v555_v40  ;;  %v711_v44 = vmax.f32 %v553_v37, 0.0 }
 0x16f   :  { %v714_v43 = vmax.f32 %v564_v39, 0.0 }
 0x170   :  { %v712_v45 = vmax.f32 %v556_v41, 0.0 }
 0x171   :  { %v760_v46 = vpack.c.bf16 %v714_v43, %v713_v42 }
 0x172   :  { %v759_v47 = vpack.c.bf16 %v712_v45, %v711_v44  ;;  %v1976_v49 = vpop.f32.mrb[36].mxu0 }
 0x173   :  { %v577_v50 = vadd.f32 %v1976_v49, %v2321_v48  ;;  %v568_v51 = vpop.f32.mrb[37].mxu0 }
 0x174   :  { %v569_v52 = vadd.f32 %v2321_v48, %v568_v51  ;;  %v1977_v53 = vpop.f32.mrb[38].mxu0  ;;  %2050 = vmatprep.mubr.bf16.mxu1 %v759_v47 }
 0x175   :  { %v580_v54 = vadd.f32 %v1977_v53, %v2321_v48  ;;  %v571_v55 = vpop.f32.mrb[39].mxu0  ;;  %2051 = vmatmul.mubr.bf16.gmra.mrb[32].mxu1 %v760_v46  ;;  %v717_v57 = vmax.f32 %v577_v50, 0.0 }
 0x176   :  { %v572_v56 = vadd.f32 %v2321_v48, %v571_v55  ;;  %v715_v59 = vmax.f32 %v569_v52, 0.0 }
 0x177   :  { %v718_v58 = vmax.f32 %v580_v54, 0.0 }
 0x178   :  { %v716_v60 = vmax.f32 %v572_v56, 0.0 }
 0x179   :  { %v762_v61 = vpack.c.bf16 %v718_v58, %v717_v57 }
 0x17a   :  { %v761_v62 = vpack.c.bf16 %v716_v60, %v715_v59  ;;  %v1980_v63 = vpop.f32.mrb[40].mxu0 }
 0x17b   :  { %v593_v0 = vadd.f32 %v1980_v63, %v2321_v48  ;;  %v584_v1 = vpop.f32.mrb[41].mxu0 }
 0x17c   :  { %v585_v2 = vadd.f32 %v2321_v48, %v584_v1  ;;  %v1981_v3 = vpop.f32.mrb[42].mxu0  ;;  %2054 = vmatprep.mubr.bf16.mxu1 %v761_v62 }
 0x17d   :  { %v596_v4 = vadd.f32 %v1981_v3, %v2321_v48  ;;  %v587_v5 = vpop.f32.mrb[43].mxu0  ;;  %2055 = vmatmul.mubr.bf16.gmra.mrb[36].mxu1 %v762_v61  ;;  %v721_v7 = vmax.f32 %v593_v0, 0.0 }
 0x17e   :  { %v588_v6 = vadd.f32 %v2321_v48, %v587_v5  ;;  %v719_v9 = vmax.f32 %v585_v2, 0.0 }
 0x17f   :  { %v722_v8 = vmax.f32 %v596_v4, 0.0 }
 0x180   :  { %v720_v10 = vmax.f32 %v588_v6, 0.0 }
 0x181   :  { %v764_v11 = vpack.c.bf16 %v722_v8, %v721_v7 }
 0x182   :  { %v763_v12 = vpack.c.bf16 %v720_v10, %v719_v9  ;;  %v1984_v13 = vpop.f32.mrb[44].mxu0 }
 0x183   :  { %v609_v14 = vadd.f32 %v1984_v13, %v2321_v48  ;;  %v600_v15 = vpop.f32.mrb[45].mxu0 }
 0x184   :  { %v601_v16 = vadd.f32 %v2321_v48, %v600_v15  ;;  %v1985_v17 = vpop.f32.mrb[46].mxu0  ;;  %2058 = vmatprep.mubr.bf16.mxu1 %v763_v12 }
 0x185   :  { %v612_v18 = vadd.f32 %v1985_v17, %v2321_v48  ;;  %v603_v19 = vpop.f32.mrb[47].mxu0  ;;  %2059 = vmatmul.mubr.bf16.gmra.mrb[40].mxu1 %v764_v11  ;;  %v725_v21 = vmax.f32 %v609_v14, 0.0 }
 0x186   :  { %v604_v20 = vadd.f32 %v2321_v48, %v603_v19  ;;  %v723_v23 = vmax.f32 %v601_v16, 0.0 }
 0x187   :  { %v726_v22 = vmax.f32 %v612_v18, 0.0 }
 0x188   :  { %v724_v24 = vmax.f32 %v604_v20, 0.0 }
 0x189   :  { %v766_v25 = vpack.c.bf16 %v726_v22, %v725_v21  ;;  %v2390_v21 = vld [vmem:[%s2475_s4] ss:$0 sm:$0xff]  ;;  %s2235_s4 = smov [#allocation8]  }
 0x18a   :  { %v765_v26 = vpack.c.bf16 %v724_v24, %v723_v23  ;;  %v1988_v27 = vpop.f32.mrb[48].mxu0  ;;  %s1460_s8 = sshll.u32 %s2235_s4, 4  ;;  %s1461_s8 = int_to_ptr.vmem [resolvable:$true] %s1460_s8 }
 0x18b   :  { %v625_v28 = vadd.f32 %v1988_v27, %v2321_v48  ;;  %v616_v29 = vpop.f32.mrb[49].mxu0  ;;  %s2202_s9 = scalar_lea.vmem %s1461_s8, 4096  ;;  %p2207_p11 = scmp.lt.s32.totalorder %s1461_s8, %s1461_s8 }
 0x18c   :  { %v617_v30 = vadd.f32 %v2321_v48, %v616_v29  ;;  %v1989_v31 = vpop.f32.mrb[50].mxu0  ;;  %2062 = vmatprep.mubr.bf16.mxu1 %v765_v26  ;;  %p2203_p10 = scmp.ne.s32.totalorder %s1461_s8, %s2202_s9  ;;  %p2208_p12 = scmp.lt.s32.totalorder %s2202_s9, %s2202_s9 }
 0x18d   :  { %v628_v32 = vadd.f32 %v1989_v31, %v2321_v48  ;;  %v619_v33 = vpop.f32.mrb[51].mxu0  ;;  %2063 = vmatmul.mubr.bf16.gmra.mrb[44].mxu1 %v766_v25  ;;  %v729_v35 = vmax.f32 %v625_v28, 0.0 }
 0x18e   :  { %v620_v34 = vadd.f32 %v2321_v48, %v619_v33  ;;  %v727_v37 = vmax.f32 %v617_v30, 0.0  ;;  %p2209_p13 = por %p2208_p12, %p2207_p11 }
 0x18f   :  { %v730_v36 = vmax.f32 %v628_v32, 0.0 }
 0x190   :  { %v728_v38 = vmax.f32 %v620_v34, 0.0  ;;  %p2210_p0 = pnand %p2209_p13, %p2203_p10 }
 0x191   :  { %v768_v39 = vpack.c.bf16 %v730_v36, %v729_v35 }
 0x192   :  { %v767_v40 = vpack.c.bf16 %v728_v38, %v727_v37  ;;  %v1992_v41 = vpop.f32.mrb[52].mxu0 }
 0x193   :  { %v641_v42 = vadd.f32 %v1992_v41, %v2321_v48  ;;  %v632_v43 = vpop.f32.mrb[53].mxu0 }
 0x194   :  { %v633_v44 = vadd.f32 %v2321_v48, %v632_v43  ;;  %v1993_v45 = vpop.f32.mrb[54].mxu0  ;;  %2066 = vmatprep.mubr.bf16.mxu1 %v767_v40 }
 0x195   :  { %v644_v46 = vadd.f32 %v1993_v45, %v2321_v48  ;;  %v635_v47 = vpop.f32.mrb[55].mxu0  ;;  %2067 = vmatmul.mubr.bf16.gmra.mrb[48].mxu1 %v768_v39  ;;  %v733_v50 = vmax.f32 %v641_v42, 0.0 }
 0x196   :  { %v636_v49 = vadd.f32 %v2321_v48, %v635_v47  ;;  %v731_v52 = vmax.f32 %v633_v44, 0.0 }
 0x197   :  { %v734_v51 = vmax.f32 %v644_v46, 0.0 }
 0x198   :  { %v732_v53 = vmax.f32 %v636_v49, 0.0 }
 0x199   :  { %v770_v54 = vpack.c.bf16 %v734_v51, %v733_v50 }
 0x19a   :  { %v769_v55 = vpack.c.bf16 %v732_v53, %v731_v52  ;;  %v1996_v56 = vpop.f32.mrb[56].mxu0 }
 0x19b   :  { %v657_v57 = vadd.f32 %v1996_v56, %v2321_v48  ;;  %v648_v58 = vpop.f32.mrb[57].mxu0 }
 0x19c   :  { %v649_v59 = vadd.f32 %v2321_v48, %v648_v58  ;;  %v1997_v60 = vpop.f32.mrb[58].mxu0  ;;  %2070 = vmatprep.mubr.bf16.mxu1 %v769_v55 }
 0x19d   :  { %v660_v61 = vadd.f32 %v1997_v60, %v2321_v48  ;;  %v651_v62 = vpop.f32.mrb[59].mxu0  ;;  %2071 = vmatmul.mubr.bf16.gmra.mrb[52].mxu1 %v770_v54  ;;  %v737_v0 = vmax.f32 %v657_v57, 0.0 }
 0x19e   :  { %v652_v63 = vadd.f32 %v2321_v48, %v651_v62  ;;  %v735_v2 = vmax.f32 %v649_v59, 0.0 }
 0x19f   :  { %v738_v1 = vmax.f32 %v660_v61, 0.0 }
 0x1a0   :  { %v736_v3 = vmax.f32 %v652_v63, 0.0 }
 0x1a1   :  { %v772_v4 = vpack.c.bf16 %v738_v1, %v737_v0 }
 0x1a2   :  { %v771_v5 = vpack.c.bf16 %v736_v3, %v735_v2  ;;  %v2000_v6 = vpop.f32.mrb[60].mxu0 }
 0x1a3   :  { %v673_v7 = vadd.f32 %v2000_v6, %v2321_v48  ;;  %v664_v8 = vpop.f32.mrb[61].mxu0 }
 0x1a4   :  { %v665_v9 = vadd.f32 %v2321_v48, %v664_v8  ;;  %v2001_v10 = vpop.f32.mrb[62].mxu0  ;;  %2074 = vmatprep.mubr.bf16.mxu1 %v771_v5 }
 0x1a5   :  { %v676_v11 = vadd.f32 %v2001_v10, %v2321_v48  ;;  %v667_v12 = vpop.f32.mrb[63].mxu0  ;;  %2075 = vmatmul.mubr.bf16.gmra.mrb[56].mxu1 %v772_v4  ;;  %v741_v14 = vmax.f32 %v673_v7, 0.0 }
 0x1a6   :  { %v668_v13 = vadd.f32 %v2321_v48, %v667_v12  ;;  %v739_v16 = vmax.f32 %v665_v9, 0.0 }
 0x1a7   :  { %v742_v15 = vmax.f32 %v676_v11, 0.0 }
 0x1a8   :  { %v740_v17 = vmax.f32 %v668_v13, 0.0 }
 0x1a9   :  { %v774_v18 = vpack.c.bf16 %v742_v15, %v741_v14 }
 0x1aa   :  { %v773_v19 = vpack.c.bf16 %v740_v17, %v739_v16 }
 0x1ac   :  { %2078 = vmatprep.mubr.bf16.mxu1 %v773_v19 }
 0x1ad   :  { %2079 = vmatmul.mubr.bf16.gmra.mrb[60].mxu1 %v774_v18 }
 0x208   :  { %v2020_v20 = vpop.f32.mrb[0].mxu1 }
 0x209   :  { %v880_v22 = vpop.f32.mrb[1].mxu1  ;;  %v889_v24 = vadd.f32 %v2020_v20, %v2390_v21 }
 0x20a   :  { %v2021_v23 = vpop.f32.mrb[2].mxu1  ;;  %v881_v26 = vadd.f32 %v2390_v21, %v880_v22 }
 0x20b   :  { %v892_v48 = vadd.f32 %v2021_v23, %v2390_v21  ;;  %v883_v25 = vpop.f32.mrb[3].mxu1 }
 0x20c   :  { %v884_v27 = vadd.f32 %v2390_v21, %v883_v25 }
 0x20d   :  { %v1659_v28 = vpack.c.bf16 %v892_v48, %v889_v24 }
 0x20e   :  { %v1654_v29 = vpack.c.bf16 %v884_v27, %v881_v26 }
 0x20f   :  { %1811 = vst [vmem:[#allocation8 + $0x8] sm:$0xff] %v1659_v28  }
 0x210   :  { %1655 = vst [vmem:[#allocation8] sm:$0xff] %v1654_v29   ;;  %v2024_v30 = vpop.f32.mrb[4].mxu1 }
 0x211   :  { %v896_v31 = vpop.f32.mrb[5].mxu1  ;;  %v905_v33 = vadd.f32 %v2024_v30, %v2390_v21 }
 0x212   :  { %v2025_v32 = vpop.f32.mrb[6].mxu1  ;;  %v897_v36 = vadd.f32 %v2390_v21, %v896_v31 }
 0x213   :  { %v908_v34 = vadd.f32 %v2025_v32, %v2390_v21  ;;  %v899_v35 = vpop.f32.mrb[7].mxu1 }
 0x214   :  { %v900_v37 = vadd.f32 %v2390_v21, %v899_v35 }
 0x215   :  { %v1669_v38 = vpack.c.bf16 %v908_v34, %v905_v33 }
 0x216   :  { %v1664_v39 = vpack.c.bf16 %v900_v37, %v897_v36 }
 0x217   :  { %1813 = vst [vmem:[#allocation8 + $0x18] sm:$0xff] %v1669_v38  }
 0x218   :  { %1812 = vst [vmem:[#allocation8 + $0x10] sm:$0xff] %v1664_v39   ;;  %v2028_v40 = vpop.f32.mrb[8].mxu1 }
 0x219   :  { %v912_v41 = vpop.f32.mrb[9].mxu1  ;;  %v921_v43 = vadd.f32 %v2028_v40, %v2390_v21 }
 0x21a   :  { %v2029_v42 = vpop.f32.mrb[10].mxu1  ;;  %v913_v46 = vadd.f32 %v2390_v21, %v912_v41 }
 0x21b   :  { %v924_v44 = vadd.f32 %v2029_v42, %v2390_v21  ;;  %v915_v45 = vpop.f32.mrb[11].mxu1 }
 0x21c   :  { %v916_v47 = vadd.f32 %v2390_v21, %v915_v45 }
 0x21d   :  { %v1679_v49 = vpack.c.bf16 %v924_v44, %v921_v43 }
 0x21e   :  { %v1674_v50 = vpack.c.bf16 %v916_v47, %v913_v46 }
 0x21f   :  { %1815 = vst [vmem:[#allocation8 + $0x28] sm:$0xff] %v1679_v49  }
 0x220   :  { %1814 = vst [vmem:[#allocation8 + $0x20] sm:$0xff] %v1674_v50   ;;  %v2032_v51 = vpop.f32.mrb[12].mxu1 }
 0x221   :  { %v928_v52 = vpop.f32.mrb[13].mxu1  ;;  %v937_v54 = vadd.f32 %v2032_v51, %v2390_v21 }
 0x222   :  { %v2033_v53 = vpop.f32.mrb[14].mxu1  ;;  %v929_v57 = vadd.f32 %v2390_v21, %v928_v52 }
 0x223   :  { %v940_v55 = vadd.f32 %v2033_v53, %v2390_v21  ;;  %v931_v56 = vpop.f32.mrb[15].mxu1 }
 0x224   :  { %v932_v58 = vadd.f32 %v2390_v21, %v931_v56 }
 0x225   :  { %v1689_v59 = vpack.c.bf16 %v940_v55, %v937_v54 }
 0x226   :  { %v1684_v60 = vpack.c.bf16 %v932_v58, %v929_v57 }
 0x227   :  { %1817 = vst [vmem:[#allocation8 + $0x38] sm:$0xff] %v1689_v59  }
 0x228   :  { %1816 = vst [vmem:[#allocation8 + $0x30] sm:$0xff] %v1684_v60   ;;  %v2036_v61 = vpop.f32.mrb[16].mxu1 }
 0x229   :  { %v944_v62 = vpop.f32.mrb[17].mxu1  ;;  %v953_v0 = vadd.f32 %v2036_v61, %v2390_v21 }
 0x22a   :  { %v2037_v63 = vpop.f32.mrb[18].mxu1  ;;  %v945_v3 = vadd.f32 %v2390_v21, %v944_v62 }
 0x22b   :  { %v956_v1 = vadd.f32 %v2037_v63, %v2390_v21  ;;  %v947_v2 = vpop.f32.mrb[19].mxu1 }
 0x22c   :  { %v948_v4 = vadd.f32 %v2390_v21, %v947_v2 }
 0x22d   :  { %v1699_v5 = vpack.c.bf16 %v956_v1, %v953_v0 }
 0x22e   :  { %v1694_v6 = vpack.c.bf16 %v948_v4, %v945_v3 }
 0x22f   :  { %1819 = vst [vmem:[#allocation8 + $0x48] sm:$0xff] %v1699_v5  }
 0x230   :  { %1818 = vst [vmem:[#allocation8 + $0x40] sm:$0xff] %v1694_v6   ;;  %v2040_v7 = vpop.f32.mrb[20].mxu1 }
 0x231   :  { %v960_v8 = vpop.f32.mrb[21].mxu1  ;;  %v969_v10 = vadd.f32 %v2040_v7, %v2390_v21 }
 0x232   :  { %v2041_v9 = vpop.f32.mrb[22].mxu1  ;;  %v961_v13 = vadd.f32 %v2390_v21, %v960_v8 }
 0x233   :  { %v972_v11 = vadd.f32 %v2041_v9, %v2390_v21  ;;  %v963_v12 = vpop.f32.mrb[23].mxu1 }
 0x234   :  { %v964_v14 = vadd.f32 %v2390_v21, %v963_v12 }
 0x235   :  { %v1709_v15 = vpack.c.bf16 %v972_v11, %v969_v10 }
 0x236   :  { %v1704_v16 = vpack.c.bf16 %v964_v14, %v961_v13 }
 0x237   :  { %1821 = vst [vmem:[#allocation8 + $0x58] sm:$0xff] %v1709_v15  }
 0x238   :  { %1820 = vst [vmem:[#allocation8 + $0x50] sm:$0xff] %v1704_v16   ;;  %v2044_v17 = vpop.f32.mrb[24].mxu1 }
 0x239   :  { %v976_v18 = vpop.f32.mrb[25].mxu1  ;;  %v985_v20 = vadd.f32 %v2044_v17, %v2390_v21 }
 0x23a   :  { %v2045_v19 = vpop.f32.mrb[26].mxu1  ;;  %v977_v24 = vadd.f32 %v2390_v21, %v976_v18 }
 0x23b   :  { %v988_v22 = vadd.f32 %v2045_v19, %v2390_v21  ;;  %v979_v23 = vpop.f32.mrb[27].mxu1 }
 0x23c   :  { %v980_v48 = vadd.f32 %v2390_v21, %v979_v23 }
 0x23d   :  { %v1719_v25 = vpack.c.bf16 %v988_v22, %v985_v20 }
 0x23e   :  { %v1714_v26 = vpack.c.bf16 %v980_v48, %v977_v24 }
 0x23f   :  { %1823 = vst [vmem:[#allocation8 + $0x68] sm:$0xff] %v1719_v25  }
 0x240   :  { %1822 = vst [vmem:[#allocation8 + $0x60] sm:$0xff] %v1714_v26   ;;  %v2048_v27 = vpop.f32.mrb[28].mxu1 }
 0x241   :  { %v992_v28 = vpop.f32.mrb[29].mxu1  ;;  %v1001_v30 = vadd.f32 %v2048_v27, %v2390_v21 }
 0x242   :  { %v2049_v29 = vpop.f32.mrb[30].mxu1  ;;  %v993_v33 = vadd.f32 %v2390_v21, %v992_v28 }
 0x243   :  { %v1004_v31 = vadd.f32 %v2049_v29, %v2390_v21  ;;  %v995_v32 = vpop.f32.mrb[31].mxu1 }
 0x244   :  { %v996_v34 = vadd.f32 %v2390_v21, %v995_v32 }
 0x245   :  { %v1729_v35 = vpack.c.bf16 %v1004_v31, %v1001_v30 }
 0x246   :  { %v1724_v36 = vpack.c.bf16 %v996_v34, %v993_v33 }
 0x247   :  { %1825 = vst [vmem:[#allocation8 + $0x78] sm:$0xff] %v1729_v35  }
 0x248   :  { %1824 = vst [vmem:[#allocation8 + $0x70] sm:$0xff] %v1724_v36   ;;  %v2052_v37 = vpop.f32.mrb[32].mxu1 }
 0x249   :  { %v1008_v38 = vpop.f32.mrb[33].mxu1  ;;  %v1017_v40 = vadd.f32 %v2052_v37, %v2390_v21 }
 0x24a   :  { %v2053_v39 = vpop.f32.mrb[34].mxu1  ;;  %v1009_v43 = vadd.f32 %v2390_v21, %v1008_v38 }
 0x24b   :  { %v1020_v41 = vadd.f32 %v2053_v39, %v2390_v21  ;;  %v1011_v42 = vpop.f32.mrb[35].mxu1 }
 0x24c   :  { %v1012_v44 = vadd.f32 %v2390_v21, %v1011_v42 }
 0x24d   :  { %v1739_v45 = vpack.c.bf16 %v1020_v41, %v1017_v40 }
 0x24e   :  { %v1734_v46 = vpack.c.bf16 %v1012_v44, %v1009_v43 }
 0x24f   :  { %1827 = vst [vmem:[#allocation8 + $0x88] sm:$0xff] %v1739_v45  }
 0x250   :  { %1826 = vst [vmem:[#allocation8 + $0x80] sm:$0xff] %v1734_v46   ;;  %v2056_v47 = vpop.f32.mrb[36].mxu1 }
 0x251   :  { %v1024_v49 = vpop.f32.mrb[37].mxu1  ;;  %v1033_v51 = vadd.f32 %v2056_v47, %v2390_v21 }
 0x252   :  { %v2057_v50 = vpop.f32.mrb[38].mxu1  ;;  %v1025_v54 = vadd.f32 %v2390_v21, %v1024_v49 }
 0x253   :  { %v1036_v52 = vadd.f32 %v2057_v50, %v2390_v21  ;;  %v1027_v53 = vpop.f32.mrb[39].mxu1 }
 0x254   :  { %v1028_v55 = vadd.f32 %v2390_v21, %v1027_v53 }
 0x255   :  { %v1749_v56 = vpack.c.bf16 %v1036_v52, %v1033_v51 }
 0x256   :  { %v1744_v57 = vpack.c.bf16 %v1028_v55, %v1025_v54 }
 0x257   :  { %1829 = vst [vmem:[#allocation8 + $0x98] sm:$0xff] %v1749_v56  }
 0x258   :  { %1828 = vst [vmem:[#allocation8 + $0x90] sm:$0xff] %v1744_v57   ;;  %v2060_v58 = vpop.f32.mrb[40].mxu1 }
 0x259   :  { %v1040_v59 = vpop.f32.mrb[41].mxu1  ;;  %v1049_v61 = vadd.f32 %v2060_v58, %v2390_v21 }
 0x25a   :  { %v2061_v60 = vpop.f32.mrb[42].mxu1  ;;  %v1041_v0 = vadd.f32 %v2390_v21, %v1040_v59 }
 0x25b   :  { %v1052_v62 = vadd.f32 %v2061_v60, %v2390_v21  ;;  %v1043_v63 = vpop.f32.mrb[43].mxu1 }
 0x25c   :  { %v1044_v1 = vadd.f32 %v2390_v21, %v1043_v63 }
 0x25d   :  { %v1759_v2 = vpack.c.bf16 %v1052_v62, %v1049_v61 }
 0x25e   :  { %v1754_v3 = vpack.c.bf16 %v1044_v1, %v1041_v0 }
 0x25f   :  { %1831 = vst [vmem:[#allocation8 + $0xa8] sm:$0xff] %v1759_v2  }
 0x260   :  { %1830 = vst [vmem:[#allocation8 + $0xa0] sm:$0xff] %v1754_v3   ;;  %v2064_v4 = vpop.f32.mrb[44].mxu1 }
 0x261   :  { %v1056_v5 = vpop.f32.mrb[45].mxu1  ;;  %v1065_v7 = vadd.f32 %v2064_v4, %v2390_v21 }
 0x262   :  { %v2065_v6 = vpop.f32.mrb[46].mxu1  ;;  %v1057_v10 = vadd.f32 %v2390_v21, %v1056_v5 }
 0x263   :  { %v1068_v8 = vadd.f32 %v2065_v6, %v2390_v21  ;;  %v1059_v9 = vpop.f32.mrb[47].mxu1 }
 0x264   :  { %v1060_v11 = vadd.f32 %v2390_v21, %v1059_v9 }
 0x265   :  { %v1769_v12 = vpack.c.bf16 %v1068_v8, %v1065_v7 }
 0x266   :  { %v1764_v13 = vpack.c.bf16 %v1060_v11, %v1057_v10 }
 0x267   :  { %1833 = vst [vmem:[#allocation8 + $0xb8] sm:$0xff] %v1769_v12  }
 0x268   :  { %1832 = vst [vmem:[#allocation8 + $0xb0] sm:$0xff] %v1764_v13   ;;  %v2068_v14 = vpop.f32.mrb[48].mxu1 }
 0x269   :  { %v1072_v15 = vpop.f32.mrb[49].mxu1  ;;  %v1081_v17 = vadd.f32 %v2068_v14, %v2390_v21 }
 0x26a   :  { %v2069_v16 = vpop.f32.mrb[50].mxu1  ;;  %v1073_v20 = vadd.f32 %v2390_v21, %v1072_v15 }
 0x26b   :  { %v1084_v18 = vadd.f32 %v2069_v16, %v2390_v21  ;;  %v1075_v19 = vpop.f32.mrb[51].mxu1 }
 0x26c   :  { %v1076_v22 = vadd.f32 %v2390_v21, %v1075_v19 }
 0x26d   :  { %v1779_v23 = vpack.c.bf16 %v1084_v18, %v1081_v17 }
 0x26e   :  { %v1774_v24 = vpack.c.bf16 %v1076_v22, %v1073_v20 }
 0x26f   :  { %1835 = vst [vmem:[#allocation8 + $0xc8] sm:$0xff] %v1779_v23  }
 0x270   :  { %1834 = vst [vmem:[#allocation8 + $0xc0] sm:$0xff] %v1774_v24   ;;  %v2072_v48 = vpop.f32.mrb[52].mxu1 }
 0x271   :  { %v1088_v25 = vpop.f32.mrb[53].mxu1  ;;  %v1097_v27 = vadd.f32 %v2072_v48, %v2390_v21 }
 0x272   :  { %v2073_v26 = vpop.f32.mrb[54].mxu1  ;;  %v1089_v30 = vadd.f32 %v2390_v21, %v1088_v25 }
 0x273   :  { %v1100_v28 = vadd.f32 %v2073_v26, %v2390_v21  ;;  %v1091_v29 = vpop.f32.mrb[55].mxu1 }
 0x274   :  { %v1092_v31 = vadd.f32 %v2390_v21, %v1091_v29 }
 0x275   :  { %v1789_v32 = vpack.c.bf16 %v1100_v28, %v1097_v27 }
 0x276   :  { %v1784_v33 = vpack.c.bf16 %v1092_v31, %v1089_v30 }
 0x277   :  { %1837 = vst [vmem:[#allocation8 + $0xd8] sm:$0xff] %v1789_v32  }
 0x278   :  { %1836 = vst [vmem:[#allocation8 + $0xd0] sm:$0xff] %v1784_v33   ;;  %v2076_v34 = vpop.f32.mrb[56].mxu1 }
 0x279   :  { %v1104_v35 = vpop.f32.mrb[57].mxu1  ;;  %v1113_v37 = vadd.f32 %v2076_v34, %v2390_v21 }
 0x27a   :  { %v2077_v36 = vpop.f32.mrb[58].mxu1  ;;  %v1105_v40 = vadd.f32 %v2390_v21, %v1104_v35 }
 0x27b   :  { %v1116_v38 = vadd.f32 %v2077_v36, %v2390_v21  ;;  %v1107_v39 = vpop.f32.mrb[59].mxu1 }
 0x27c   :  { %v1108_v41 = vadd.f32 %v2390_v21, %v1107_v39 }
 0x27d   :  { %v1799_v42 = vpack.c.bf16 %v1116_v38, %v1113_v37 }
 0x27e   :  { %v1794_v43 = vpack.c.bf16 %v1108_v41, %v1105_v40 }
 0x27f   :  { %1839 = vst [vmem:[#allocation8 + $0xe8] sm:$0xff] %v1799_v42  }
 0x280   :  { %1838 = vst [vmem:[#allocation8 + $0xe0] sm:$0xff] %v1794_v43   ;;  %v2080_v44 = vpop.f32.mrb[60].mxu1 }
 0x281   :  { %v1120_v45 = vpop.f32.mrb[61].mxu1  ;;  %v1129_v47 = vadd.f32 %v2080_v44, %v2390_v21 }
 0x282   :  { %v2081_v46 = vpop.f32.mrb[62].mxu1  ;;  %v1121_v51 = vadd.f32 %v2390_v21, %v1120_v45 }
 0x283   :  { %v1132_v49 = vadd.f32 %v2081_v46, %v2390_v21  ;;  %v1123_v50 = vpop.f32.mrb[63].mxu1 }
 0x284   :  { %v1124_v52 = vadd.f32 %v2390_v21, %v1123_v50 }
 0x285   :  { %v1809_v53 = vpack.c.bf16 %v1132_v49, %v1129_v47 }
 0x286   :  { %v1804_v54 = vpack.c.bf16 %v1124_v52, %v1121_v51 }
 0x287   :  { %1841 = vst [vmem:[#allocation8 + $0xf8] sm:$0xff] %v1809_v53  }
 0x288   :  { %1840 = vst [vmem:[#allocation8 + $0xf0] sm:$0xff] %v1804_v54  }
 0x289   :  { %2213 = shalt.err (!%p2210_p0)
}
 0x28a   :  { %s2214_s12 = scalar_lea.hbm %s2476_s5, 4096 }
 0x28b   :  { %p2215_p1 = scmp.ne.s32.totalorder %s2476_s5, %s2214_s12  ;;  %p2218_p2 = scmp.lt.u32.totalorder %s2214_s12, %s2476_s5 }
 0x28d   :  { %p2220_p3 = pnand %p2218_p2, %p2215_p1 }
 0x28f   :  { %2223 = shalt.err (!%p2220_p3)
}
 0x290   :  { %1466 = dma.vmem_to_hbm [thread:$0]  %s1461_s8, 4096, %s2476_s5, [#allocation4], %s2232_s30, %s2232_s30, %s2233_s6  }
 0x291   :  { %2228 = dma.done.wait [#allocation4], 4096  }
 0x292   :  { %2229 = vsyncadd [#allocation4], 4294963200 }
 0x293   :  { %1470 = vsyncpa [#allocation3], 1 }
 0x294   :  { %1471 = vsyncpa [#allocation6], 1 }
 0x295   :  { %1472 = vsyncpa [#allocation4], 1 }

</bundles_post_ra>
